<compile_context>
chip_gen: v7x
topology: tpu7x:2x2x1
jax: 0.10.0
libtpu: 0.0.40
codegen_flags: <defaults>
</compile_context>

<pallas_src>
import functools

import jax
import jax.numpy as jnp
from jax import lax
from jax.experimental import pallas as pl
from jax.experimental.pallas import tpu as pltpu

BN_EPS = 1e-5
LANES = 128


def _round_up(n, m):
    return (n + m - 1) // m * m


# ---------------------------------------------------------------------------
# Kernels
# ---------------------------------------------------------------------------
def _fused_kernel(x_ref, w1_ref, gamma_ref, beta_ref, w2_ref, b2_ref, o_ref,
                  *, batch):
    """Whole batch resident in VMEM: matmul1 + BN(train) + ReLU + matmul2."""
    h = jnp.dot(x_ref[...], w1_ref[...], preferred_element_type=jnp.float32)

    # one-pass batch statistics (biased variance, like BatchNorm1d training mode)
    inv_b = 1.0 / batch
    mean = jnp.sum(h, axis=0, keepdims=True) * inv_b
    var = jnp.maximum(
        jnp.sum(h * h, axis=0, keepdims=True) * inv_b - mean * mean, 0.0)

    # BN folded into a single FMA (b1 already cancelled by mean subtraction)
    scale = gamma_ref[...] * lax.rsqrt(var + BN_EPS)
    shift = beta_ref[...] - mean * scale
    a = jnp.maximum(h * scale + shift, 0.0)

    y = jnp.dot(a.astype(w2_ref.dtype), w2_ref[...],
                preferred_element_type=jnp.float32) + b2_ref[...]
    o_ref[...] = y.astype(o_ref.dtype)


def _stats_kernel(x_ref, w1_ref, sum_ref, sumsq_ref):
    """Pass 1: accumulate full-batch sum / sum-of-squares of h = x @ w1."""
    @pl.when(pl.program_id(0) == 0)
    def _():
        sum_ref[...] = jnp.zeros_like(sum_ref)
        sumsq_ref[...] = jnp.zeros_like(sumsq_ref)

    h = jnp.dot(x_ref[...], w1_ref[...], preferred_element_type=jnp.float32)
    sum_ref[...] += jnp.sum(h, axis=0, keepdims=True)
    sumsq_ref[...] += jnp.sum(h * h, axis=0, keepdims=True)


def _apply_kernel(x_ref, w1_ref, sum_ref, sumsq_ref, gamma_ref, beta_ref,
                  w2_ref, b2_ref, o_ref, *, batch):
    """Pass 2: normalize with full-batch stats + ReLU + second matmul."""
    h = jnp.dot(x_ref[...], w1_ref[...], preferred_element_type=jnp.float32)

    inv_b = 1.0 / batch
    mean = sum_ref[...] * inv_b
    var = jnp.maximum(sumsq_ref[...] * inv_b - mean * mean, 0.0)
    scale = gamma_ref[...] * lax.rsqrt(var + BN_EPS)
    shift = beta_ref[...] - mean * scale
    a = jnp.maximum(h * scale + shift, 0.0)

    y = jnp.dot(a.astype(w2_ref.dtype), w2_ref[...],
                preferred_element_type=jnp.float32) + b2_ref[...]
    o_ref[...] = y.astype(o_ref.dtype)


# ---------------------------------------------------------------------------
# Wrapper
# ---------------------------------------------------------------------------
def prepare_params(w1, b1, gamma, beta, w2, b2, *, compute_dtype=jnp.bfloat16):
    """One-time parameter prep: transpose to [in,out], zero-pad lane dims to 128,
    cast matmul operands to the MXU compute dtype.

    b1 is accepted for API parity with the PyTorch module but dropped:
    training-mode BatchNorm subtracts the batch mean, cancelling it exactly.
    """
    del b1
    hid, in_dim = w1.shape
    out_dim = w2.shape[0]
    hid_p = _round_up(hid, LANES)
    out_p = _round_up(out_dim, LANES)

    w1_t = jnp.zeros((in_dim, hid_p), compute_dtype).at[:, :hid].set(
        w1.T.astype(compute_dtype))
    w2_t = jnp.zeros((hid_p, out_p), compute_dtype).at[:hid, :out_dim].set(
        w2.T.astype(compute_dtype))
    gamma_p = jnp.zeros((1, hid_p), jnp.float32).at[:, :hid].set(
        gamma.astype(jnp.float32))
    beta_p = jnp.zeros((1, hid_p), jnp.float32).at[:, :hid].set(
        beta.astype(jnp.float32))
    b2_p = jnp.zeros((1, out_p), jnp.float32).at[:, :out_dim].set(
        b2.astype(jnp.float32))

    return dict(w1_t=w1_t, w2_t=w2_t, gamma=gamma_p, beta=beta_p, b2=b2_p,
                in_dim=in_dim, hid_p=hid_p, out_dim=out_dim, out_p=out_p,
                compute_dtype=compute_dtype)


def projection_head(x, params, *, tile_b=256):
    """Forward pass of the projection head. x: [B, in_dim] float array."""
    B, in_dim = x.shape
    assert in_dim == params["in_dim"]
    cdt = params["compute_dtype"]
    hid_p, out_p, out_dim = params["hid_p"], params["out_p"], params["out_dim"]
    w1_t, w2_t = params["w1_t"], params["w2_t"]
    gamma, beta, b2 = params["gamma"], params["beta"], params["b2"]
    x_c = x.astype(cdt)

    bpe = jnp.dtype(cdt).itemsize
    param_bytes = (w1_t.size + w2_t.size) * bpe \
        + (gamma.size + beta.size + b2.size) * 4

    if B <= tile_b:
        # ---- fully fused single-program path (whole batch in VMEM) ----
        cost = pl.CostEstimate(
            flops=2 * B * (in_dim * hid_p + hid_p * out_p) + 8 * B * hid_p,
            transcendentals=hid_p,
            bytes_accessed=x_c.size * bpe + param_bytes + B * out_p * 4)
        vmem = pl.BlockSpec(memory_space=pltpu.MemorySpace.VMEM)
        out = pl.pallas_call(
            functools.partial(_fused_kernel, batch=B),
            out_shape=jax.ShapeDtypeStruct((B, out_p), jnp.float32),
            in_specs=[vmem] * 6,
            out_specs=vmem,
            cost_estimate=cost,
        )(x_c, w1_t, gamma, beta, w2_t, b2)
        return out[:, :out_dim]

    # ---- two-pass batch-tiled path (full-batch BN statistics) ----
    # TODO(synk): tile_b is far below any VMEM limit at these widths; re-derive
    # it per generation (v7x: 64 MiB VMEM vs 128 MiB on v5e/v6e) if widths grow.
    n_tiles = pl.cdiv(B, tile_b)
    b_pad = n_tiles * tile_b
    if b_pad != B:
        # Zero rows contribute exactly 0 to sum/sumsq (no linear bias in-kernel),
        # so statistics stay correct as long as we divide by the true B.
        x_c = jnp.pad(x_c, ((0, b_pad - B), (0, 0)))

    row_spec = pl.BlockSpec((1, hid_p), lambda i: (0, 0))

    # pass 1: full-batch sum / sum-of-squares, accumulated across the grid.
    stats_cost = pl.CostEstimate(
        flops=2 * b_pad * in_dim * hid_p + 3 * b_pad * hid_p,
        transcendentals=0,
        bytes_accessed=x_c.size * bpe + w1_t.size * bpe + 2 * hid_p * 4)
    h_sum, h_sumsq = pl.pallas_call(
        _stats_kernel,
        out_shape=(jax.ShapeDtypeStruct((1, hid_p), jnp.float32),
                   jax.ShapeDtypeStruct((1, hid_p), jnp.float32)),
        grid=(n_tiles,),
        in_specs=[pl.BlockSpec((tile_b, in_dim), lambda i: (i, 0)),
                  pl.BlockSpec((in_dim, hid_p), lambda i: (0, 0))],
        out_specs=(row_spec, row_spec),
        compiler_params=pltpu.CompilerParams(
            dimension_semantics=("arbitrary",)),
        cost_estimate=stats_cost,
    )(x_c, w1_t)

    # pass 2: normalize with full-batch stats + ReLU + second matmul (parallel).
    apply_cost = pl.CostEstimate(
        flops=2 * b_pad * (in_dim * hid_p + hid_p * out_p) + 6 * b_pad * hid_p,
        transcendentals=hid_p * n_tiles,
        bytes_accessed=x_c.size * bpe + param_bytes + 2 * hid_p * 4
        + b_pad * out_p * 4)
    out = pl.pallas_call(
        functools.partial(_apply_kernel, batch=B),
        out_shape=jax.ShapeDtypeStruct((b_pad, out_p), jnp.float32),
        grid=(n_tiles,),
        in_specs=[pl.BlockSpec((tile_b, in_dim), lambda i: (i, 0)),
                  pl.BlockSpec((in_dim, hid_p), lambda i: (0, 0)),
                  row_spec, row_spec, row_spec, row_spec,
                  pl.BlockSpec((hid_p, out_p), lambda i: (0, 0)),
                  pl.BlockSpec((1, out_p), lambda i: (0, 0))],
        out_specs=pl.BlockSpec((tile_b, out_p), lambda i: (i, 0)),
        compiler_params=pltpu.CompilerParams(
            dimension_semantics=("parallel",)),
        cost_estimate=apply_cost,
    )(x_c, w1_t, h_sum, h_sumsq, gamma, beta, w2_t, b2)
    return out[:B, :out_dim]


# ---------------------------------------------------------------------------
# Pure-JAX f32 reference (matches PyTorch module in training mode, incl. b1)
# ---------------------------------------------------------------------------
def _reference(x, w1, b1, gamma, beta, w2, b2):
    h = jnp.dot(x, w1.T, precision=lax.Precision.HIGHEST) + b1
    mean = jnp.mean(h, axis=0, keepdims=True)
    var = jnp.mean((h - mean) ** 2, axis=0, keepdims=True)   # biased, like BN
    h_bn = (h - mean) / jnp.sqrt(var + BN_EPS) * gamma + beta
    a = jnp.maximum(h_bn, 0.0)
    return jnp.dot(a, w2.T, precision=lax.Precision.HIGHEST) + b2


if __name__ == "__main__":
    IN_DIM, HIDDEN, OUT_DIM = 32, 64, 16

    key = jax.random.PRNGKey(0)
    kx1, kx2, kw1, kb1, kw2, kb2 = jax.random.split(key, 6)

    # PyTorch-like uniform(-1/sqrt(fan_in), 1/sqrt(fan_in)) init; BN defaults.
    s1 = 1.0 / float(IN_DIM) ** 0.5
    s2 = 1.0 / float(HIDDEN) ** 0.5
    w1 = jax.random.uniform(kw1, (HIDDEN, IN_DIM), jnp.float32, -s1, s1)
    b1 = jax.random.uniform(kb1, (HIDDEN,), jnp.float32, -s1, s1)
    gamma = jnp.ones((HIDDEN,), jnp.float32)   # BatchNorm1d default weight
    beta = jnp.zeros((HIDDEN,), jnp.float32)   # BatchNorm1d default bias
    w2 = jax.random.uniform(kw2, (OUT_DIM, HIDDEN), jnp.float32, -s2, s2)
    b2 = jax.random.uniform(kb2, (OUT_DIM,), jnp.float32, -s2, s2)

    # --- test 1: small batch -> fused single-program path, f32 compute ---
    B1 = 8
    x1 = jax.random.normal(kx1, (B1, IN_DIM), jnp.float32)
    p_f32 = prepare_params(w1, b1, gamma, beta, w2, b2,
                           compute_dtype=jnp.float32)
    out1 = jax.block_until_ready(projection_head(x1, p_f32))
    ref1 = _reference(x1, w1, b1, gamma, beta, w2, b2)
    assert out1.shape == (B1, OUT_DIM)
    assert jnp.allclose(out1, ref1, atol=2e-2, rtol=2e-2), \
        float(jnp.max(jnp.abs(out1 - ref1)))

    # --- test 2: larger batch -> two-pass batch-tiled path, bf16 MXU inputs ---
    B2 = 256
    x2 = jax.random.normal(kx2, (B2, IN_DIM), jnp.float32)
    p_bf16 = prepare_params(w1, b1, gamma, beta, w2, b2,
                            compute_dtype=jnp.bfloat16)
    out2 = jax.block_until_ready(projection_head(x2, p_bf16, tile_b=128))
    ref2 = _reference(x2, w1, b1, gamma, beta, w2, b2)
    assert out2.shape == (B2, OUT_DIM)
    assert jnp.allclose(out2, ref2, atol=5e-2, rtol=5e-2), \
        float(jnp.max(jnp.abs(out2 - ref2)))

    print("KERNEL_OK")
</pallas_src>

<mosaic_0001>
module attributes {stable_mosaic.version = 11 : i64} {
  func.func @_fused_kernel(%arg0: memref<8x32xf32, #tpu.memory_space<vmem>>, %arg1: memref<32x128xf32, #tpu.memory_space<vmem>>, %arg2: memref<1x128xf32, #tpu.memory_space<vmem>>, %arg3: memref<1x128xf32, #tpu.memory_space<vmem>>, %arg4: memref<128x128xf32, #tpu.memory_space<vmem>>, %arg5: memref<1x128xf32, #tpu.memory_space<vmem>>, %arg6: memref<8x128xf32, #tpu.memory_space<vmem>>) attributes {dimension_semantics = [], scalar_prefetch = 0 : i64, scratch_operands = 0 : i64, tpu.core_type = #tpu.core_type<tc>} {
    %c0 = arith.constant 0 : index
    %c0_0 = arith.constant 0 : index
    %0 = vector.load %arg0[%c0, %c0_0] : memref<8x32xf32, #tpu.memory_space<vmem>>, vector<8x32xf32>
    %c0_1 = arith.constant 0 : index
    %c0_2 = arith.constant 0 : index
    %1 = vector.load %arg1[%c0_1, %c0_2] : memref<32x128xf32, #tpu.memory_space<vmem>>, vector<32x128xf32>
    %cst = arith.constant dense<0.000000e+00> : vector<8x128xf32>
    %2 = tpu.matmul %0, %1, %cst {dimension_numbers = #tpu.dot_dimension_numbers<[1], [0], [0], [1], [0, 0, 1, 1], [], []>} : vector<8x32xf32>, vector<32x128xf32>, vector<8x128xf32> -> vector<8x128xf32>
    %cst_3 = arith.constant dense<0.000000e+00> : vector<128xf32>
    %3 = vector.multi_reduction <add>, %2, %cst_3 [0] : vector<8x128xf32> to vector<128xf32>
    %4 = vector.shape_cast %3 : vector<128xf32> to vector<1x128xf32>
    %cst_4 = arith.constant 1.250000e-01 : f32
    %5 = vector.broadcast %cst_4 : f32 to vector<1x128xf32>
    %6 = arith.mulf %4, %5 : vector<1x128xf32>
    %7 = arith.mulf %2, %2 : vector<8x128xf32>
    %cst_5 = arith.constant dense<0.000000e+00> : vector<128xf32>
    %8 = vector.multi_reduction <add>, %7, %cst_5 [0] : vector<8x128xf32> to vector<128xf32>
    %9 = vector.shape_cast %8 : vector<128xf32> to vector<1x128xf32>
    %cst_6 = arith.constant 1.250000e-01 : f32
    %10 = vector.broadcast %cst_6 : f32 to vector<1x128xf32>
    %11 = arith.mulf %9, %10 : vector<1x128xf32>
    %12 = arith.mulf %6, %6 : vector<1x128xf32>
    %13 = arith.subf %11, %12 : vector<1x128xf32>
    %cst_7 = arith.constant 0.000000e+00 : f32
    %14 = vector.broadcast %cst_7 : f32 to vector<1x128xf32>
    %15 = arith.maximumf %13, %14 : vector<1x128xf32>
    %c0_8 = arith.constant 0 : index
    %c0_9 = arith.constant 0 : index
    %16 = vector.load %arg2[%c0_8, %c0_9] : memref<1x128xf32, #tpu.memory_space<vmem>>, vector<1x128xf32>
    %cst_10 = arith.constant 9.99999974E-6 : f32
    %17 = vector.broadcast %cst_10 : f32 to vector<1x128xf32>
    %18 = arith.addf %15, %17 : vector<1x128xf32>
    %19 = math.rsqrt %18 : vector<1x128xf32>
    %20 = arith.mulf %16, %19 : vector<1x128xf32>
    %c0_11 = arith.constant 0 : index
    %c0_12 = arith.constant 0 : index
    %21 = vector.load %arg3[%c0_11, %c0_12] : memref<1x128xf32, #tpu.memory_space<vmem>>, vector<1x128xf32>
    %22 = arith.mulf %6, %20 : vector<1x128xf32>
    %23 = arith.subf %21, %22 : vector<1x128xf32>
    %24 = vector.broadcast %20 : vector<1x128xf32> to vector<8x128xf32>
    %25 = arith.mulf %2, %24 : vector<8x128xf32>
    %26 = vector.broadcast %23 : vector<1x128xf32> to vector<8x128xf32>
    %27 = arith.addf %25, %26 : vector<8x128xf32>
    %cst_13 = arith.constant 0.000000e+00 : f32
    %28 = vector.broadcast %cst_13 : f32 to vector<8x128xf32>
    %29 = arith.maximumf %27, %28 : vector<8x128xf32>
    %c0_14 = arith.constant 0 : index
    %c0_15 = arith.constant 0 : index
    %30 = vector.load %arg4[%c0_14, %c0_15] : memref<128x128xf32, #tpu.memory_space<vmem>>, vector<128x128xf32>
    %cst_16 = arith.constant dense<0.000000e+00> : vector<8x128xf32>
    %31 = tpu.matmul %29, %30, %cst_16 {dimension_numbers = #tpu.dot_dimension_numbers<[1], [0], [0], [1], [0, 0, 1, 1], [], []>} : vector<8x128xf32>, vector<128x128xf32>, vector<8x128xf32> -> vector<8x128xf32>
    %c0_17 = arith.constant 0 : index
    %c0_18 = arith.constant 0 : index
    %32 = vector.load %arg5[%c0_17, %c0_18] : memref<1x128xf32, #tpu.memory_space<vmem>>, vector<1x128xf32>
    %33 = vector.broadcast %32 : vector<1x128xf32> to vector<8x128xf32>
    %34 = arith.addf %31, %33 : vector<8x128xf32>
    %c0_19 = arith.constant 0 : index
    %c0_20 = arith.constant 0 : index
    %35 = vector.load %arg6[%c0_19, %c0_20] : memref<8x128xf32, #tpu.memory_space<vmem>>, vector<8x128xf32>
    tpu.vector_store %arg6[%c0_19, %c0_20], %34 {strides = array<i32>} : memref<8x128xf32, #tpu.memory_space<vmem>>, vector<8x128xf32>,
    return
  }
}

</mosaic_0001>

<bundles_post_ra>
// kernel: tpu_custom_call.1
= control target key start
LH: loop header
LB: loop body
LE: loop exit
PB: predicated region body
PF: predicated region fallthrough
CT: control target
= control target key end

     0   :  { %11 = vsyncpa [#allocation3], 0  ;;  %s604_s0 = inlined_call_operand.hbm [shape: f32[8,32], index: 0, kind: input, shape index: {}]   ;;  %s605_s1 = inlined_call_operand.hbm [shape: f32[32,128], index: 1, kind: input, shape index: {}]   ;;  %s606_s2 = inlined_call_operand.vmem [shape: f32[1,128], index: 2, kind: input, shape index: {}]   ;;  %s607_s3 = inlined_call_operand.vmem [shape: f32[1,128], index: 3, kind: input, shape index: {}]   ;;  %s608_s4 = inlined_call_operand.hbm [shape: f32[128,128], index: 4, kind: input, shape index: {}]   ;;  %s609_s5 = inlined_call_operand.vmem [shape: f32[1,128], index: 5, kind: input, shape index: {}]   ;;  %s610_s6 = inlined_call_operand.hbm [shape: f32[8,128], index: 6, kind: output, shape index: {}]  }
   0x1   :  { %12 = vsyncpa [#allocation6], 0 }
   0x2   :  { %13 = vsyncpa [#allocation4], 0  ;;  %s497_s21 = smov [#allocation5]   ;;  %s403_s25 = scalar_lea.hbm %s605_s1, 512 }
   0x3   :  { %s29_s22 = sshll.u32 %s497_s21, 4  ;;  %p404_p0 = scmp.ne.s32.totalorder %s605_s1, %s403_s25  ;;  %s30_s22 = int_to_ptr.vmem [resolvable:$true] %s29_s22 }
   0x4   :  { %p407_p1 = scmp.lt.u32.totalorder %s403_s25, %s605_s1 }
   0x6   :  { %p409_p2 = pnand %p407_p1, %p404_p0 }
   0x8   :  { %412 = shalt.err (!%p409_p2)
}
   0x9   :  { %s413_s30 = scalar_lea.vmem %s30_s22, 512  ;;  %p418_p4 = scmp.lt.s32.totalorder %s30_s22, %s30_s22 }
   0xa   :  { %p414_p3 = scmp.ne.s32.totalorder %s30_s22, %s413_s30  ;;  %p419_p5 = scmp.lt.s32.totalorder %s413_s30, %s413_s30 }
   0xc   :  { %p420_p6 = por %p419_p5, %p418_p4 }
   0xe   :  { %p421_p7 = pnand %p420_p6, %p414_p3 }
  0x10   :  { %424 = shalt.err (!%p421_p7)
}
  0x11   :  { %s498_s7 = smov 128   ;;  %s499_s8 = smov 8  }
  0x12   :  { %35 = dma.hbm_to_vmem [thread:$0]  %s605_s1, 512, %s30_s22, [#allocation6], %s498_s7, %s498_s7, %s499_s8  }
  0x13   :  { %s500_s11 = smov [#allocation2]   ;;  %s501_s13 = smov [#allocation7]  }
  0x14   :  { %s20_s12 = sshll.u32 %s500_s11, 4  ;;  %s45_s14 = sshll.u32 %s501_s13, 4  ;;  %s21_s12 = int_to_ptr.vmem [resolvable:$true] %s20_s12  ;;  %s46_s14 = int_to_ptr.vmem [resolvable:$true] %s45_s14 }
  0x15   :  { %s425_s17 = scalar_lea.hbm %s604_s0, 128 }
  0x16   :  { %p426_p8 = scmp.ne.s32.totalorder %s604_s0, %s425_s17  ;;  %p429_p9 = scmp.lt.u32.totalorder %s425_s17, %s604_s0 }
  0x18   :  { %p431_p10 = pnand %p429_p9, %p426_p8 }
  0x1a   :  { %434 = shalt.err (!%p431_p10)
}
  0x1b   :  { %s435_s1 = scalar_lea.vmem %s21_s12, 128  ;;  %p440_p12 = scmp.lt.s32.totalorder %s21_s12, %s21_s12 }
  0x1c   :  { %p436_p11 = scmp.ne.s32.totalorder %s21_s12, %s435_s1  ;;  %p441_p13 = scmp.lt.s32.totalorder %s435_s1, %s435_s1 }
  0x1e   :  { %p442_p0 = por %p441_p13, %p440_p12 }
  0x20   :  { %p443_p1 = pnand %p442_p0, %p436_p11 }
  0x22   :  { %446 = shalt.err (!%p443_p1)
}
  0x23   :  { %23 = dma.hbm_to_vmem [thread:$0]  %s604_s0, 128, %s21_s12, [#allocation3]  }
  0x24   :  { %s447_s26 = scalar_lea.hbm %s608_s4, 2048 }
  0x25   :  { %p448_p2 = scmp.ne.s32.totalorder %s608_s4, %s447_s26  ;;  %p451_p3 = scmp.lt.u32.totalorder %s447_s26, %s608_s4 }
  0x27   :  { %p453_p4 = pnand %p451_p3, %p448_p2 }
  0x29   :  { %456 = shalt.err (!%p453_p4)
}
  0x2a   :  { %s457_s9 = scalar_lea.vmem %s46_s14, 2048  ;;  %p462_p6 = scmp.lt.s32.totalorder %s46_s14, %s46_s14 }
  0x2b   :  { %p458_p5 = scmp.ne.s32.totalorder %s46_s14, %s457_s9  ;;  %p463_p7 = scmp.lt.s32.totalorder %s457_s9, %s457_s9 }
  0x2d   :  { %p464_p8 = por %p463_p7, %p462_p6 }
  0x2f   :  { %p465_p9 = pnand %p464_p8, %p458_p5 }
  0x31   :  { %468 = shalt.err (!%p465_p9)
}
  0x32   :  { %51 = dma.hbm_to_vmem [thread:$0]  %s608_s4, 2048, %s46_s14, [#allocation6], %s498_s7, %s498_s7, %s499_s8  }
  0x33   :  { %491 = dma.done.wait [#allocation3], 128  }
  0x34   :  { %492 = vsyncadd [#allocation3], 4294967168 }
  0x35   :  { %493 = dma.done.wait [#allocation6], 2560  }
  0x36   :  { %494 = vsyncadd [#allocation6], 4294964736  ;;  %v502_v0 = vmov 0.0|0.0   ;;  %vm503_vm0 = vmmov 0   ;;  %v504_v1 = vmov 0.0   ;;  %v64_v2 = vld [vmem:[#allocation5] sm:$0xff]  ;;  %v168_v54 = vlaneseq }
  0x37   :  { %362 = vmatprep.subr.bf16.mxu0 %v502_v0  ;;  %324 = vmatprep.mubr.msk.f32.mxu0 %vm503_vm0, %v504_v1  ;;  %v65_v3 = vld [vmem:[#allocation5 + $0x8] sm:$0xff]  ;;  %v66_v4 = vld [vmem:[#allocation5 + $0x10] sm:$0xff]  ;;  %v67_v6 = vld [vmem:[#allocation5 + $0x18] sm:$0xff]  ;;  %vm68_vm1 = vcmask 261120  }
  0x38   :  { %368 = vmatprep.subr.bf16.mxu1 %v502_v0  ;;  %359 = vmatprep.mubr.msk.f32.mxu1 %vm503_vm0, %v504_v1  ;;  %v363_v5 = vpack.c.bf16 %v65_v3, %v64_v2  ;;  %v366_v7 = vpack.c.bf16 %v67_v6, %v66_v4  ;;  %v63_v8 = vld [vmem:[#allocation2] sm:$0xff]  ;;  %v182_v9 = vld [vmem:[#allocation7] sm:$0xff]  ;;  %v183_v10 = vld [vmem:[#allocation7 + $0x8] sm:$0xff]  ;;  %v169_v55 = vshrl.u32 %v168_v54, 7 }
  0x39   :  { %v369_v11 = vpack.c.bf16 %v183_v10, %v182_v9  ;;  %v184_v12 = vld [vmem:[#allocation7 + $0x10] sm:$0xff]  ;;  %v185_v13 = vld [vmem:[#allocation7 + $0x18] sm:$0xff]  ;;  %v186_v15 = vld [vmem:[#allocation7 + $0x20] sm:$0xff] }
  0x3a   :  { %364 = vmatpush3.bf16.msra.mxu0 %v363_v5  ;;  %v372_v14 = vpack.c.bf16 %v185_v13, %v184_v12  ;;  %v187_v16 = vld [vmem:[#allocation7 + $0x28] sm:$0xff]  ;;  %v188_v18 = vld [vmem:[#allocation7 + $0x30] sm:$0xff]  ;;  %v189_v19 = vld [vmem:[#allocation7 + $0x38] sm:$0xff]  ;;  %v170_v57 = vsub.s32 0, %v169_v55 }
  0x3b   :  { %365 = vmatprep.subr.bf16.mxu0 %v502_v0  ;;  %370 = vmatpush3.bf16.msra.mxu1 %v369_v11  ;;  %v375_v17 = vpack.c.bf16 %v187_v16, %v186_v15  ;;  %v378_v20 = vpack.c.bf16 %v189_v19, %v188_v18  ;;  %v190_v21 = vld [vmem:[#allocation7 + $0x40] sm:$0xff]  ;;  %v191_v22 = vld [vmem:[#allocation7 + $0x48] sm:$0xff]  ;;  %v192_v24 = vld [vmem:[#allocation7 + $0x50] sm:$0xff] }
  0x3c   :  { %371 = vmatprep.subr.bf16.mxu1 %v502_v0  ;;  %v381_v23 = vpack.c.bf16 %v191_v22, %v190_v21  ;;  %v193_v25 = vld [vmem:[#allocation7 + $0x58] sm:$0xff]  ;;  %v194_v27 = vld [vmem:[#allocation7 + $0x60] sm:$0xff]  ;;  %v195_v28 = vld [vmem:[#allocation7 + $0x68] sm:$0xff] }
  0x3d   :  { %v384_v26 = vpack.c.bf16 %v193_v25, %v192_v24  ;;  %v387_v29 = vpack.c.bf16 %v195_v28, %v194_v27  ;;  %v196_v30 = vld [vmem:[#allocation7 + $0x70] sm:$0xff]  ;;  %v197_v31 = vld [vmem:[#allocation7 + $0x78] sm:$0xff] }
  0x3e   :  { %367 = vmatpush3.bf16.msra.mxu0 %v366_v7  ;;  %v390_v32 = vpack.c.bf16 %v197_v31, %v196_v30  ;;  %v160_v56 = vld [vmem:[%s606_s2] sm:$0x1]  ;;  %s505_s2 = smov [#allocation8]  }
  0x3f   :  { %373 = vmatpush3.bf16.msra.mxu1 %v372_v14  ;;  %v164_v60 = vld [vmem:[%s607_s3] sm:$0x1]  ;;  %s282_s14 = sshll.u32 %s505_s2, 4  ;;  %s283_s14 = int_to_ptr.vmem [resolvable:$true] %s282_s14 }
  0x40   :  { %374 = vmatprep.subr.bf16.mxu1 %v502_v0  ;;  %v293_v4 = vld [vmem:[%s609_s5] ss:$0 sm:$0xff]  ;;  %s469_s3 = scalar_lea.vmem %s283_s14, 128  ;;  %p474_p11 = scmp.lt.s32.totalorder %s283_s14, %s283_s14 }
  0x41   :  { %325 = vmatmul.mubr.msk.f32.vlgmr.msra.gmra.mrb[0].mxu0 %vm68_vm1, %v63_v8  ;;  %p470_p10 = scmp.ne.s32.totalorder %s283_s14, %s469_s3  ;;  %p475_p12 = scmp.lt.s32.totalorder %s469_s3, %s469_s3 }
  0x43   :  { %376 = vmatpush3.bf16.msra.mxu1 %v375_v17  ;;  %p476_p13 = por %p475_p12, %p474_p11 }
  0x44   :  { %377 = vmatprep.subr.bf16.mxu1 %v502_v0 }
  0x45   :  { %p477_p0 = pnand %p476_p13, %p470_p10 }
  0x47   :  { %379 = vmatpush3.bf16.msra.mxu1 %v378_v20 }
  0x48   :  { %380 = vmatprep.subr.bf16.mxu1 %v502_v0 }
  0x4b   :  { %382 = vmatpush3.bf16.msra.mxu1 %v381_v23 }
  0x4c   :  { %383 = vmatprep.subr.bf16.mxu1 %v502_v0 }
  0x4f   :  { %385 = vmatpush3.bf16.msra.mxu1 %v384_v26 }
  0x50   :  { %386 = vmatprep.subr.bf16.mxu1 %v502_v0 }
  0x53   :  { %388 = vmatpush3.bf16.msra.mxu1 %v387_v29 }
  0x54   :  { %389 = vmatprep.subr.bf16.mxu1 %v502_v0 }
  0x57   :  { %391 = vmatpush3.bf16.msra.mxu1 %v390_v32 }
 0x114   :  { %v138_v33 = vpop.f32.mrb[0].mxu0 }
 0x115   :  { %v142_v34 = vrot.slane %v138_v33, 4  ;;  %v149_v35 = vmul.f32 %v138_v33, %v138_v33  ;;  %v326_v36 = vpop.f32.mrb[1].mxu0 }
 0x117   :  { %v143_v37 = vadd.f32 %v142_v34, %v138_v33  ;;  %v150_v38 = vrot.slane %v149_v35, 4 }
 0x119   :  { %v144_v39 = vrot.slane %v143_v37, 2  ;;  %v151_v40 = vadd.f32 %v150_v38, %v149_v35 }
 0x11b   :  { %v145_v41 = vadd.f32 %v144_v39, %v143_v37  ;;  %v152_v42 = vrot.slane %v151_v40, 2 }
 0x11d   :  { %v146_v43 = vrot.slane %v145_v41, 1  ;;  %v153_v44 = vadd.f32 %v152_v42, %v151_v40 }
 0x11f   :  { %v147_v45 = vadd.f32 %v146_v43, %v145_v41  ;;  %v154_v46 = vrot.slane %v153_v44, 1 }
 0x121   :  { %v148_v47 = vmul.f32 0.125, %v147_v45  ;;  %v155_v48 = vadd.f32 %v154_v46, %v153_v44 }
 0x123   :  { %v156_v49 = vmul.f32 0.125, %v155_v48  ;;  %v157_v50 = vmul.f32 %v148_v47, %v148_v47 }
 0x125   :  { %v158_v51 = vsub.f32 %v156_v49, %v157_v50 }
 0x127   :  { %v159_v52 = vmax.f32 %v158_v51, 0.0 }
 0x129   :  { %v161_v53 = vadd.f32 1e-05, %v159_v52 }
 0x12b   :  { %401 = vrsqrt.f32 %v161_v53 }
 0x135   :  { %v402_v58 = vpop.eup %401 }
 0x136   :  { %v163_v59 = vmul.f32 %v402_v58, %v160_v56 }
 0x138   :  { %v171_v61 = vrot.slane %v163_v59, %v170_v57  ;;  %v165_v62 = vmul.f32 %v163_v59, %v148_v47 }
 0x13a   :  { %v166_v63 = vsub.f32 %v164_v60, %v165_v62  ;;  %v173_v0 = vmul.f32 %v171_v61, %v138_v33 }
 0x13c   :  { %v178_v1 = vrot.slane %v166_v63, %v170_v57 }
 0x13e   :  { %v180_v2 = vadd.f32 %v178_v1, %v173_v0 }
 0x140   :  { %v181_v3 = vmax.f32 %v180_v2, 0.0 }
 0x142   :  { %360 = vmatmul.mubr.f32.vlgmr.msra.gmra.mrb[0].mxu1 %v181_v3 }
 0x215   :  { %v271_v5 = vpop.f32.mrb[0].mxu1 }
 0x216   :  { %v272_v6 = vadd.f32 %v293_v4, %v271_v5  ;;  %v361_v7 = vpop.f32.mrb[1].mxu1 }
 0x218   :  { %275 = vst [vmem:[#allocation8] sm:$0xff] %v272_v6 }
 0x219   :  { %480 = shalt.err (!%p477_p0)
}
 0x21a   :  { %s481_s17 = scalar_lea.hbm %s610_s6, 128 }
 0x21b   :  { %p482_p1 = scmp.ne.s32.totalorder %s610_s6, %s481_s17  ;;  %p485_p2 = scmp.lt.u32.totalorder %s481_s17, %s610_s6 }
 0x21d   :  { %p487_p3 = pnand %p485_p2, %p482_p1 }
 0x21f   :  { %490 = shalt.err (!%p487_p3)
}
 0x220   :  { %285 = dma.vmem_to_hbm [thread:$0]  %s283_s14, 128, %s610_s6, [#allocation4]  }
 0x221   :  { %495 = dma.done.wait [#allocation4], 128  }
 0x222   :  { %496 = vsyncadd [#allocation4], 4294967168 }
 0x223   :  { %289 = vsyncpa [#allocation3], 1 }
 0x224   :  { %290 = vsyncpa [#allocation6], 1 }
 0x225   :  { %291 = vsyncpa [#allocation4], 1 }

</bundles_post_ra>
